<compile_context>
chip_gen: v7x
topology: tpu7x:2x2x1
jax: 0.10.0
libtpu: 0.0.40
codegen_flags: <defaults>
</compile_context>

<pallas_src>
import math
from functools import partial

import jax
import jax.numpy as jnp
from jax.experimental import pallas as pl
from jax.experimental.pallas import tpu as pltpu


# ------------------------- tiling helpers -------------------------

def _round_up(x, m):
    return ((x + m - 1) // m) * m


def _pick_tile(total, preferred, align):
    """Largest tile <= preferred that divides `total` and is `align`-aligned.

    Falls back to the full dimension (single block) when no aligned divisor
    exists -- the full dim always satisfies the (8,128) block constraint.
    # TODO(synk): cap the fallback with a pad+mask epilogue so a pathological
    # dimension cannot blow the scoped-VMEM budget on v7x.
    """
    if total <= preferred:
        return total
    t = (preferred // align) * align
    while t >= align:
        if total % t == 0:
            return t
        t -= align
    return total


def _cparams(*sems):
    return pltpu.CompilerParams(
        dimension_semantics=sems,
        vmem_limit_bytes=32 * 1024 * 1024)


# ------------------------- tiled matmul (linear) -------------------------

def _matmul_kernel(x_ref, w_ref, o_ref, acc_ref):
    @pl.when(pl.program_id(2) == 0)
    def _():
        acc_ref[...] = jnp.zeros_like(acc_ref)

    acc_ref[...] += jnp.dot(x_ref[...], w_ref[...],
                            preferred_element_type=jnp.float32)

    @pl.when(pl.program_id(2) == pl.num_programs(2) - 1)
    def _():
        o_ref[...] = acc_ref[...].astype(o_ref.dtype)


def linear(x2d, w_t, out_dtype=jnp.bfloat16):
    """x2d: (M, K) activations; w_t: (K, N) bf16 pre-transposed weight."""
    x2d = x2d.astype(jnp.bfloat16)
    M, K = x2d.shape
    K2, N = w_t.shape
    assert K == K2
    tm = _pick_tile(M, 256, 8)
    tn = _pick_tile(N, 512, 128)
    tk = _pick_tile(K, 512, 128)
    return pl.pallas_call(
        _matmul_kernel,
        out_shape=jax.ShapeDtypeStruct((M, N), out_dtype),
        grid=(M // tm, N // tn, K // tk),
        in_specs=[
            pl.BlockSpec((tm, tk), lambda i, j, k: (i, k)),
            pl.BlockSpec((tk, tn), lambda i, j, k: (k, j)),
        ],
        out_specs=pl.BlockSpec((tm, tn), lambda i, j, k: (i, j)),
        scratch_shapes=[pltpu.VMEM((tm, tn), jnp.float32)],
        compiler_params=_cparams("parallel", "parallel", "arbitrary"),
    )(x2d, w_t)


# ------------------------- RMSNorm (row-tiled, bf16 out) -------------------------

def _rmsnorm_kernel(x_ref, w_ref, o_ref, *, eps):
    x = x_ref[...].astype(jnp.float32)
    var = jnp.mean(x * x, axis=-1, keepdims=True)
    o_ref[...] = (x * jax.lax.rsqrt(var + eps) * w_ref[...]).astype(o_ref.dtype)


def rmsnorm(x2d, weight, eps):
    M, D = x2d.shape
    tm = _pick_tile(M, 256, 8)        # capped for v5e/v7x scoped VMEM
    return pl.pallas_call(
        partial(_rmsnorm_kernel, eps=eps),
        out_shape=jax.ShapeDtypeStruct((M, D), jnp.bfloat16),
        grid=(M // tm,),
        in_specs=[
            pl.BlockSpec((tm, D), lambda i: (i, 0)),
            pl.BlockSpec((1, D), lambda i: (0, 0)),
        ],
        out_specs=pl.BlockSpec((tm, D), lambda i: (i, 0)),
        compiler_params=_cparams("parallel"),
    )(x2d.astype(jnp.bfloat16), weight.reshape(1, D))


# ------------------------- fused SwiGLU feed-forward -------------------------

def _swiglu_up_kernel(x_ref, w1_ref, w3_ref, h_ref, g_acc, u_acc):
    @pl.when(pl.program_id(2) == 0)
    def _():
        g_acc[...] = jnp.zeros_like(g_acc)
        u_acc[...] = jnp.zeros_like(u_acc)

    xb = x_ref[...]
    g_acc[...] += jnp.dot(xb, w1_ref[...], preferred_element_type=jnp.float32)
    u_acc[...] += jnp.dot(xb, w3_ref[...], preferred_element_type=jnp.float32)

    @pl.when(pl.program_id(2) == pl.num_programs(2) - 1)
    def _():
        g = g_acc[...]
        h_ref[...] = (g * jax.nn.sigmoid(g) * u_acc[...]).astype(h_ref.dtype)


def feed_forward(x2d, w1_t, w3_t, w2_t):
    """x2d: (M, D); w1_t/w3_t: (D, Hd) bf16; w2_t: (Hd, D) bf16."""
    x2d = x2d.astype(jnp.bfloat16)
    M, D = x2d.shape
    Hd = w1_t.shape[1]
    tm = _pick_tile(M, 256, 8)
    th = _pick_tile(Hd, 512, 128)
    tk = _pick_tile(D, 512, 128)
    h_mid = pl.pallas_call(
        _swiglu_up_kernel,
        out_shape=jax.ShapeDtypeStruct((M, Hd), jnp.bfloat16),
        grid=(M // tm, Hd // th, D // tk),
        in_specs=[
            pl.BlockSpec((tm, tk), lambda i, j, k: (i, k)),
            pl.BlockSpec((tk, th), lambda i, j, k: (k, j)),
            pl.BlockSpec((tk, th), lambda i, j, k: (k, j)),
        ],
        out_specs=pl.BlockSpec((tm, th), lambda i, j, k: (i, j)),
        scratch_shapes=[pltpu.VMEM((tm, th), jnp.float32),
                        pltpu.VMEM((tm, th), jnp.float32)],
        compiler_params=_cparams("parallel", "parallel", "arbitrary"),
    )(x2d, w1_t, w3_t)
    return linear(h_mid, w2_t)


# ------------------------- flash attention (GQA-grouped, q-tiled) -------------------------

def _flash_attn_kernel(q_ref, k_ref, v_ref, o_ref, m_sc, l_sc, acc_sc, *,
                       scale, start_pos, kv_len, causal, blk_q, blk_k, n_rep):
    qi = pl.program_id(2)
    j = pl.program_id(3)
    HD = q_ref.shape[-1]

    @pl.when(j == 0)
    def _():
        m_sc[...] = jnp.full_like(m_sc, -jnp.inf)
        l_sc[...] = jnp.zeros_like(l_sc)
        acc_sc[...] = jnp.zeros_like(acc_sc)

    def body():
        # All n_rep query heads of this KV head share the K/V block.
        q = q_ref[0].reshape(n_rep * blk_q, HD)      # bf16, row = head*blk_q + pos
        k = k_ref[0, 0]                              # (blk_k, HD) bf16
        v = v_ref[0, 0]                              # (blk_k, HD) bf16

        s = jax.lax.dot_general(q, k, (((1,), (1,)), ((), ())),
                                preferred_element_type=jnp.float32) * scale

        kv_pos = j * blk_k + jax.lax.broadcasted_iota(jnp.int32, s.shape, 1)
        valid = kv_pos < kv_len
        if causal:
            row = jax.lax.broadcasted_iota(jnp.int32, s.shape, 0)
            q_pos = start_pos + qi * blk_q + (row % blk_q)
            valid = jnp.logical_and(valid, kv_pos <= q_pos)
        s = jnp.where(valid, s, -jnp.inf)

        m_prev = m_sc[...]
        m_new = jnp.maximum(m_prev, jnp.max(s, axis=-1, keepdims=True))
        alpha = jnp.exp(m_prev - m_new)
        p = jnp.exp(s - m_new)
        l_sc[...] = alpha * l_sc[...] + jnp.sum(p, axis=-1, keepdims=True)
        acc_sc[...] = alpha * acc_sc[...] + jax.lax.dot_general(
            p.astype(jnp.bfloat16), v, (((1,), (0,)), ((), ())),
            preferred_element_type=jnp.float32)
        m_sc[...] = m_new

    if causal:
        # Skip KV blocks entirely above the causal diagonal of this q tile.
        q_max = start_pos + (qi + 1) * blk_q - 1
        pl.when(j * blk_k <= q_max)(body)
    else:
        body()

    @pl.when(j == pl.num_programs(3) - 1)
    def _():
        out = acc_sc[...] * pl.reciprocal(l_sc[...], approx=True)
        o_ref[0] = out.reshape(n_rep, blk_q, HD).astype(o_ref.dtype)


def flash_attention(q, k, v, *, scale, start_pos, causal):
    """q: (B, H, S, HD) bf16; k/v: (B, KV, T, HD) bf16 (un-replicated GQA)."""
    B, H, S, HD = q.shape
    KV, T = k.shape[1], k.shape[2]
    n_rep = H // KV

    blk_q = _pick_tile(S, 256, 8)
    blk_k = 512 if T > 512 else _round_up(T, 8)
    t_pad = _round_up(T, blk_k)
    if t_pad != T:
        pad = ((0, 0), (0, 0), (0, t_pad - T), (0, 0))
        k = jnp.pad(k, pad)
        v = jnp.pad(v, pad)
    n_q, n_k = S // blk_q, t_pad // blk_k

    def q_map(b, g, qi, j):
        return (b, g, qi, 0)

    if causal:
        def kv_map(b, g, qi, j):
            # Clamp so off-diagonal steps request the already-resident block
            # (no extra DMA); the in-kernel pl.when skips their compute.
            last = (start_pos + (qi + 1) * blk_q - 1) // blk_k
            return (b, g, jnp.minimum(j, last), 0)
    else:
        def kv_map(b, g, qi, j):
            return (b, g, j, 0)

    kernel = partial(_flash_attn_kernel, scale=scale, start_pos=start_pos,
                     kv_len=T, causal=causal, blk_q=blk_q, blk_k=blk_k,
                     n_rep=n_rep)
    return pl.pallas_call(
        kernel,
        out_shape=jax.ShapeDtypeStruct((B, H, S, HD), jnp.bfloat16),
        grid=(B, KV, n_q, n_k),
        in_specs=[
            pl.BlockSpec((1, n_rep, blk_q, HD), q_map),
            pl.BlockSpec((1, 1, blk_k, HD), kv_map),
            pl.BlockSpec((1, 1, blk_k, HD), kv_map),
        ],
        out_specs=pl.BlockSpec((1, n_rep, blk_q, HD), q_map),
        scratch_shapes=[pltpu.VMEM((n_rep * blk_q, 1), jnp.float32),
                        pltpu.VMEM((n_rep * blk_q, 1), jnp.float32),
                        pltpu.VMEM((n_rep * blk_q, HD), jnp.float32)],
        compiler_params=_cparams("parallel", "parallel", "parallel",
                                 "arbitrary"),
    )(q, k, v)


# ------------------------- plain-JAX glue -------------------------

def precompute_freqs_cis(head_dim, end, theta=10000.0):
    inv = 1.0 / (theta ** (jnp.arange(0, head_dim, 2)[: head_dim // 2]
                           .astype(jnp.float32) / head_dim))
    t = jnp.arange(end, dtype=jnp.float32)
    ang = jnp.outer(t, inv)                       # (end, head_dim // 2)
    return jnp.cos(ang), jnp.sin(ang)


def apply_rotary_emb(xq, xk, cos, sin):
    # Complex-pair rotation (elementwise glue shared by both paths).
    # TODO(synk): fuse RoPE into the QKV matmul epilogue with pltpu.roll.
    def rot(x):
        B, S, H, D = x.shape
        xr = x.astype(jnp.float32).reshape(B, S, H, D // 2, 2)
        re, im = xr[..., 0], xr[..., 1]
        c = cos[None, :, None, :]
        s = sin[None, :, None, :]
        return jnp.stack([re * c - im * s, re * s + im * c],
                         axis=-1).reshape(B, S, H, D).astype(x.dtype)
    return rot(xq), rot(xk)


def init_params(key, cfg):
    def dense_t(k, in_d, out_d):
        # torch nn.Linear weight is (out, in); store pre-transposed (in, out)
        # and pre-cast to bf16 once so kernels never transpose or re-cast.
        w = 0.02 * jax.random.normal(k, (out_d, in_d), jnp.float32)
        return jnp.transpose(w).astype(jnp.bfloat16)

    H, KV, HD = cfg['n_heads'], cfg['n_kv_heads'], cfg['head_dim']
    keys = iter(jax.random.split(key, 2 + 7 * cfg['n_layers']))
    params = {
        'embed': 0.02 * jax.random.normal(
            next(keys), (cfg['vocab_size'], cfg['dim']), jnp.float32),
        'layers': [],
        'norm': jnp.ones((cfg['dim'],), jnp.float32),
        'lm_head_t': dense_t(next(keys), cfg['dim'], cfg['vocab_size']),
    }
    for _ in range(cfg['n_layers']):
        wq_t = dense_t(next(keys), cfg['dim'], H * HD)
        wk_t = dense_t(next(keys), cfg['dim'], KV * HD)
        wv_t = dense_t(next(keys), cfg['dim'], KV * HD)
        params['layers'].append({
            'input_ln': jnp.ones((cfg['dim'],), jnp.float32),
            'post_ln': jnp.ones((cfg['dim'],), jnp.float32),
            # Fused QKV projection: x is streamed from HBM once.
            'wqkv_t': jnp.concatenate([wq_t, wk_t, wv_t], axis=1),
            'wo_t': dense_t(next(keys), H * HD, cfg['dim']),
            'w1_t': dense_t(next(keys), cfg['dim'], cfg['hidden_dim']),
            'w3_t': dense_t(next(keys), cfg['dim'], cfg['hidden_dim']),
            'w2_t': dense_t(next(keys), cfg['hidden_dim'], cfg['dim']),
        })
    return params


def attention_block(p, x, start_pos, cos, sin, cfg, ops):
    B, S, dim = x.shape
    H, KV, HD = cfg['n_heads'], cfg['n_kv_heads'], cfg['head_dim']
    x2d = x.reshape(B * S, dim)

    qkv = ops['linear'](x2d, p['wqkv_t'])                 # (B*S, (H+2KV)*HD)
    q_end, k_end = H * HD, (H + KV) * HD
    xq = qkv[:, :q_end].reshape(B, S, H, HD)
    xk = qkv[:, q_end:k_end].reshape(B, S, KV, HD)
    xv = qkv[:, k_end:].reshape(B, S, KV, HD)
    xq, xk = apply_rotary_emb(xq, xk, cos, sin)

    # TODO(synk): a persistent KV cache written back via input_output_aliases
    # (start_pos via scalar prefetch) would remove this concat + per-step
    # recompilation; here positions [0, start_pos) mirror the reference
    # module's zero-initialized cache contents.
    if start_pos > 0:
        zpad = jnp.zeros((B, start_pos, KV, HD), xk.dtype)
        keys = jnp.concatenate([zpad, xk], axis=1)
        values = jnp.concatenate([zpad, xv], axis=1)
    else:
        keys, values = xk, xv

    # TODO(synk): these transposes materialize copies; a transpose-free layout
    # needs sub-8 second-minor attention blocks which we avoid for robustness.
    q = jnp.transpose(xq, (0, 2, 1, 3))       # (B, H, S, HD)
    k = jnp.transpose(keys, (0, 2, 1, 3))     # (B, KV, T, HD) - never replicated
    v = jnp.transpose(values, (0, 2, 1, 3))

    out = ops['attn'](q, k, v, scale=1.0 / math.sqrt(HD),
                      start_pos=start_pos, causal=(S > 1))
    out = jnp.transpose(out, (0, 2, 1, 3)).reshape(B * S, H * HD)
    return ops['linear'](out, p['wo_t']).reshape(B, S, dim)


def transformer_forward(params, tokens, start_pos, cfg, freqs, ops):
    B, S = tokens.shape
    dim = cfg['dim']
    # TODO(synk): embedding gather stays in plain JAX (no simple Pallas gather).
    h = jnp.take(params['embed'], tokens, axis=0).astype(jnp.bfloat16)
    cos_all, sin_all = freqs
    cos = cos_all[start_pos:start_pos + S]
    sin = sin_all[start_pos:start_pos + S]

    for p in params['layers']:
        hn = ops['rmsnorm'](h.reshape(B * S, dim), p['input_ln'],
                            cfg['norm_eps']).reshape(B, S, dim)
        h = h + attention_block(p, hn, start_pos, cos, sin, cfg, ops)
        hn2 = ops['rmsnorm'](h.reshape(B * S, dim), p['post_ln'],
                             cfg['norm_eps'])
        h = h + ops['ff'](hn2, p['w1_t'], p['w3_t'], p['w2_t']).reshape(B, S, dim)

    hn = ops['rmsnorm'](h.reshape(B * S, dim), params['norm'], cfg['norm_eps'])
    logits = ops['linear'](hn, params['lm_head_t'], out_dtype=jnp.float32)
    return logits.reshape(B, S, cfg['vocab_size'])


# ---------------- pure-JAX reference ops (same precision policy) ----------------

def _ref_linear(x2d, w_t, out_dtype=jnp.bfloat16):
    return jnp.dot(x2d.astype(jnp.bfloat16), w_t,
                   preferred_element_type=jnp.float32).astype(out_dtype)


def _ref_rmsnorm(x2d, w, eps):
    x = x2d.astype(jnp.float32)
    var = jnp.mean(x * x, axis=-1, keepdims=True)
    return (x * jax.lax.rsqrt(var + eps) * w[None, :]).astype(jnp.bfloat16)


def _ref_ff(x2d, w1_t, w3_t, w2_t):
    xb = x2d.astype(jnp.bfloat16)
    g = jnp.dot(xb, w1_t, preferred_element_type=jnp.float32)
    u = jnp.dot(xb, w3_t, preferred_element_type=jnp.float32)
    h_mid = (g * jax.nn.sigmoid(g) * u).astype(jnp.bfloat16)
    return _ref_linear(h_mid, w2_t)


def _ref_attn(q, k, v, *, scale, start_pos, causal):
    B, H, S, HD = q.shape
    KV, T = k.shape[1], k.shape[2]
    n_rep = H // KV
    k = jnp.repeat(k, n_rep, axis=1)
    v = jnp.repeat(v, n_rep, axis=1)
    s = jnp.einsum('bhqd,bhkd->bhqk', q, k,
                   preferred_element_type=jnp.float32) * scale
    if causal:
        q_pos = start_pos + jnp.arange(S)[:, None]
        kv_pos = jnp.arange(T)[None, :]
        s = jnp.where((kv_pos <= q_pos)[None, None], s, -jnp.inf)
    m = jnp.max(s, axis=-1, keepdims=True)
    p = jnp.exp(s - m)
    l = jnp.sum(p, axis=-1, keepdims=True)
    out = jnp.einsum('bhqk,bhkd->bhqd', p.astype(jnp.bfloat16), v,
                     preferred_element_type=jnp.float32) / l
    return out.astype(jnp.bfloat16)


PALLAS_OPS = dict(linear=linear, rmsnorm=rmsnorm, ff=feed_forward,
                  attn=flash_attention)
REF_OPS = dict(linear=_ref_linear, rmsnorm=_ref_rmsnorm, ff=_ref_ff,
               attn=_ref_attn)


if __name__ == "__main__":
    cfg = dict(dim=32, n_heads=4, n_kv_heads=2, head_dim=8, hidden_dim=64,
               n_layers=2, max_batch_size=2, max_seq_len=16, vocab_size=64,
               norm_eps=1e-5)
    key = jax.random.PRNGKey(0)
    pkey, tkey = jax.random.split(key)
    params = init_params(pkey, cfg)
    freqs = precompute_freqs_cis(cfg['head_dim'], cfg['max_seq_len'] * 2)
    tokens = jax.random.randint(tkey, (2, 8), 0, cfg['vocab_size'])
    start_pos = 0

    logits = transformer_forward(params, tokens, start_pos, cfg, freqs,
                                 PALLAS_OPS)
    logits = jax.block_until_ready(logits)

    ref = transformer_forward(params, tokens, start_pos, cfg, freqs, REF_OPS)
    ref = jax.block_until_ready(ref)

    assert logits.shape == (2, 8, cfg['vocab_size'])
    assert bool(jnp.all(jnp.isfinite(logits)))
    max_err = float(jnp.max(jnp.abs(logits - ref)))
    assert jnp.allclose(logits, ref, atol=1e-2, rtol=2e-2), max_err
    print("KERNEL_OK")
</pallas_src>

<mosaic_0001>
module attributes {stable_mosaic.version = 11 : i64} {
  func.func @_rmsnorm_kernel(%arg0: i32, %arg1: memref<16x32xbf16, #tpu.memory_space<vmem>>, %arg2: memref<1x32xf32, #tpu.memory_space<vmem>>, %arg3: memref<16x32xbf16, #tpu.memory_space<vmem>>) attributes {dimension_semantics = [#tpu.dimension_semantics<parallel>], iteration_bounds = array<i64: 1>, scalar_prefetch = 0 : i64, scratch_operands = 0 : i64, tpu.core_type = #tpu.core_type<tc>, window_params = [{transform_indices = @transform_0, window_bounds = array<i64: 16, 32>}, {pipeline_mode = #tpu.pipeline_mode<synchronous>, transform_indices = @transform_1, window_bounds = array<i64: 1, 32>}, {transform_indices = @transform_2, window_bounds = array<i64: 16, 32>}]} {
    %c0 = arith.constant 0 : index
    %c0_0 = arith.constant 0 : index
    %0 = vector.load %arg1[%c0, %c0_0] : memref<16x32xbf16, #tpu.memory_space<vmem>>, vector<16x32xbf16>
    %1 = arith.extf %0 : vector<16x32xbf16> to vector<16x32xf32>
    %2 = arith.mulf %1, %1 : vector<16x32xf32>
    %cst = arith.constant dense<0.000000e+00> : vector<16xf32>
    %3 = vector.multi_reduction <add>, %2, %cst [1] : vector<16x32xf32> to vector<16xf32>
    %4 = vector.shape_cast %3 : vector<16xf32> to vector<16x1xf32>
    %cst_1 = arith.constant 3.200000e+01 : f32
    %5 = vector.broadcast %cst_1 : f32 to vector<16x1xf32>
    %6 = arith.divf %4, %5 : vector<16x1xf32>
    %cst_2 = arith.constant 9.99999974E-6 : f32
    %7 = vector.broadcast %cst_2 : f32 to vector<16x1xf32>
    %8 = arith.addf %6, %7 : vector<16x1xf32>
    %9 = math.rsqrt %8 : vector<16x1xf32>
    %10 = vector.broadcast %9 : vector<16x1xf32> to vector<16x32xf32>
    %11 = arith.mulf %1, %10 : vector<16x32xf32>
    %c0_3 = arith.constant 0 : index
    %c0_4 = arith.constant 0 : index
    %12 = vector.load %arg2[%c0_3, %c0_4] : memref<1x32xf32, #tpu.memory_space<vmem>>, vector<1x32xf32>
    %13 = vector.broadcast %12 : vector<1x32xf32> to vector<16x32xf32>
    %14 = arith.mulf %11, %13 : vector<16x32xf32>
    %15 = arith.truncf %14 : vector<16x32xf32> to vector<16x32xbf16>
    %c0_5 = arith.constant 0 : index
    %c0_6 = arith.constant 0 : index
    %16 = vector.load %arg3[%c0_5, %c0_6] : memref<16x32xbf16, #tpu.memory_space<vmem>>, vector<16x32xbf16>
    tpu.vector_store %arg3[%c0_5, %c0_6], %15 {strides = array<i32>} : memref<16x32xbf16, #tpu.memory_space<vmem>>, vector<16x32xbf16>,
    return
  }
  func.func @transform_0(%arg0: i32) -> (i32, i32) {
    %c0_i32 = arith.constant 0 : i32
    %c0_i32_0 = arith.constant 0 : i32
    return %arg0, %c0_i32 : i32, i32
  }
  func.func @transform_1(%arg0: i32) -> (i32, i32) {
    %c0_i32 = arith.constant 0 : i32
    %c0_i32_0 = arith.constant 0 : i32
    %c0_i32_1 = arith.constant 0 : i32
    return %c0_i32, %c0_i32_0 : i32, i32
  }
  func.func @transform_2(%arg0: i32) -> (i32, i32) {
    %c0_i32 = arith.constant 0 : i32
    %c0_i32_0 = arith.constant 0 : i32
    return %arg0, %c0_i32 : i32, i32
  }
}

</mosaic_0001>

<bundles_post_ra>
// kernel: tpu_custom_call.1
= control target key start
LH: loop header
LB: loop body
LE: loop exit
PB: predicated region body
PF: predicated region fallthrough
CT: control target
= control target key end

     0   :  { %7 = vsyncpa [#allocation3], 0  ;;  %s202_s0 = inlined_call_operand.hbm [shape: bf16[16,32], index: 0, kind: input, shape index: {}]   ;;  %s203_s1 = inlined_call_operand.vmem [shape: f32[1,32], index: 1, kind: input, shape index: {}]   ;;  %s204_s2 = inlined_call_operand.hbm [shape: bf16[16,32], index: 2, kind: output, shape index: {}]  }
   0x1   :  { %8 = vsyncpa [#allocation4], 0  ;;  %s150_s9 = smov [#allocation2]   ;;  %s102_s13 = scalar_lea.hbm %s202_s0, 128 }
   0x2   :  { %s14_s10 = sshll.u32 %s150_s9, 4  ;;  %p103_p0 = scmp.ne.s32.totalorder %s202_s0, %s102_s13  ;;  %s15_s10 = int_to_ptr.vmem [resolvable:$true] %s14_s10 }
   0x3   :  { %p106_p1 = scmp.lt.u32.totalorder %s102_s13, %s202_s0 }
   0x5   :  { %p108_p2 = pnand %p106_p1, %p103_p0 }
   0x7   :  { %111 = shalt.err (!%p108_p2)
}
   0x8   :  { %s112_s18 = scalar_lea.vmem %s15_s10, 128  ;;  %p117_p4 = scmp.lt.s32.totalorder %s15_s10, %s15_s10 }
   0x9   :  { %p113_p3 = scmp.ne.s32.totalorder %s15_s10, %s112_s18  ;;  %p118_p5 = scmp.lt.s32.totalorder %s112_s18, %s112_s18 }
   0xb   :  { %p119_p6 = por %p118_p5, %p117_p4 }
   0xd   :  { %p120_p7 = pnand %p119_p6, %p113_p3 }
   0xf   :  { %123 = shalt.err (!%p120_p7)
}
  0x10   :  { %s151_s19 = smov 64   ;;  %s152_s20 = smov 4  }
  0x11   :  { %20 = dma.hbm_to_vmem [thread:$0]  %s202_s0, 128, %s15_s10, [#allocation3], %s151_s19, %s151_s19, %s152_s20  }
  0x12   :  { %146 = dma.done.wait [#allocation3], 128  }
  0x13   :  { %147 = vsyncadd [#allocation3], 4294967168  ;;  %v91_v0 = vld [vmem:[#allocation2] sm:$0xff]   ;;  %vm32_vm0 = vcmask 261120   ;;  %vm65_vm1 = vcmask 257024   ;;  %s153_s24 = smov [#allocation5]  }
  0x14   :  { %v92_v1 = vunpack.c.l.bf16 %v91_v0  ;;  %v93_v2 = vunpack.c.h.bf16 %v91_v0  ;;  %v85_v14 = vld [vmem:[%s203_s1] ss:$0 sm:$0xff]  ;;  %s73_s25 = sshll.u32 %s153_s24, 4  ;;  %s74_s25 = int_to_ptr.vmem [resolvable:$true] %s73_s25 }
  0x15   :  { %s124_s26 = scalar_lea.vmem %s74_s25, 128  ;;  %p129_p9 = scmp.lt.s32.totalorder %s74_s25, %s74_s25 }
  0x16   :  { %v30_v3 = vmul.f32 %v92_v1, %v92_v1  ;;  %v31_v4 = vmul.f32 %v93_v2, %v93_v2  ;;  %p125_p8 = scmp.ne.s32.totalorder %s74_s25, %s124_s26  ;;  %p130_p10 = scmp.lt.s32.totalorder %s124_s26, %s124_s26 }
  0x18   :  { %v33_v5 = vsel %vm32_vm0, %v30_v3, 0.0  ;;  %v36_v6 = vsel %vm32_vm0, %v31_v4, 0.0  ;;  %p131_p11 = por %p130_p10, %p129_p9 }
  0x19   :  { %34 = vadd.xlane.f32.xlu0 %v33_v5 }
  0x1a   :  { %p132_p12 = pnand %p131_p11, %p125_p8 }
  0x1d   :  { %37 = vadd.xlane.f32.xlu0 %v36_v6 }
  0xa6   :  { %v35_v7 = vpop.xlane.xlu0 %34 }
  0xa7   :  { %v40_v8 = vmul.f32 0.03125, %v35_v7 }
  0xa9   :  { %v42_v9 = vadd.f32 1e-05, %v40_v8 }
  0xaa   :  { %v38_v10 = vpop.xlane.xlu0 %37 }
  0xab   :  { %98 = vrsqrt.f32 %v42_v9  ;;  %v41_v11 = vmul.f32 0.03125, %v38_v10 }
  0xad   :  { %v43_v12 = vadd.f32 1e-05, %v41_v11 }
  0xaf   :  { %100 = vrsqrt.f32 %v43_v12 }
  0xb5   :  { %v99_v13 = vpop.eup %98 }
  0xb6   :  { %v46_v15 = vmul.f32 %v99_v13, %v92_v1 }
  0xb8   :  { %v55_v16 = vmul.f32 %v85_v14, %v46_v15 }
  0xb9   :  { %v101_v17 = vpop.eup %100 }
  0xba   :  { %v47_v18 = vmul.f32 %v101_v17, %v93_v2  ;;  %v88_v19 = vpack.c.bf16 %v55_v16, %v55_v16 }
  0xbc   :  { %v56_v20 = vmul.f32 %v85_v14, %v47_v18  ;;  %66 = vst.msk [vmem:[#allocation5] sm:$0xf] %vm65_vm1, %v88_v19 }
  0xbe   :  { %v89_v21 = vpack.c.bf16 %v56_v20, %v56_v20 }
  0xc0   :  { %67 = vst.msk [vmem:[#allocation5 + $0x4] sm:$0xf] %vm65_vm1, %v89_v21 }
  0xc1   :  { %135 = shalt.err (!%p132_p12)
}
  0xc2   :  { %s136_s28 = scalar_lea.hbm %s204_s2, 128 }
  0xc3   :  { %p137_p13 = scmp.ne.s32.totalorder %s204_s2, %s136_s28  ;;  %p140_p0 = scmp.lt.u32.totalorder %s136_s28, %s204_s2 }
  0xc5   :  { %p142_p1 = pnand %p140_p0, %p137_p13 }
  0xc7   :  { %145 = shalt.err (!%p142_p1)
}
  0xc8   :  { %79 = dma.vmem_to_hbm [thread:$0]  %s74_s25, 128, %s204_s2, [#allocation4], %s151_s19, %s151_s19, %s152_s20  }
  0xc9   :  { %148 = dma.done.wait [#allocation4], 128  }
  0xca   :  { %149 = vsyncadd [#allocation4], 4294967168 }
  0xcb   :  { %83 = vsyncpa [#allocation3], 1 }
  0xcc   :  { %84 = vsyncpa [#allocation4], 1 }

</bundles_post_ra>
